<compile_context>
chip_gen: v5e
topology: v5e:2x2
jax: 0.10.0
libtpu: 0.0.40
codegen_flags: <defaults>
</compile_context>

<pallas_src>
import jax
import jax.numpy as jnp
from jax.experimental import pallas as pl
from jax.experimental.pallas import tpu as pltpu


def _round_up(x, m):
    return (x + m - 1) // m * m


def actor_kernel(obs_ref, w1_ref, b1_ref, w2_ref, b2_ref, w3_ref, b3_ref,
                 out_ref):
    """Fused 3-layer MLP on one TB-row batch tile.

    obs_ref : [TB, obs_dim]  bf16   (streamed per grid step)
    w*_ref  : bf16 weights, [in, out] layout (resident across grid steps)
    b*_ref  : f32 biases, [1, out]  (resident)
    out_ref : [TB, out_pad]  f32, lane-dense (out_pad = round_up(action_dim,128))
    """
    x = obs_ref[...]                                              # bf16 [TB, obs_dim]

    # Layer 1: MXU matmul (bf16 in, f32 acc) + bias + ReLU (f32 on VPU).
    h1 = jnp.dot(x, w1_ref[...], preferred_element_type=jnp.float32)
    h1 = jnp.maximum(h1 + b1_ref[...], 0.0)                       # f32 [TB, 512]

    # Layer 2.
    h2 = jnp.dot(h1.astype(jnp.bfloat16), w2_ref[...],
                 preferred_element_type=jnp.float32)
    h2 = jnp.maximum(h2 + b2_ref[...], 0.0)                       # f32 [TB, 128]

    # Layer 3 + tanh (EUP, f32).
    h3 = jnp.dot(h2.astype(jnp.bfloat16), w3_ref[...],
                 preferred_element_type=jnp.float32)
    out_ref[...] = jnp.tanh(h3 + b3_ref[...])                     # f32 [TB, out_pad]


def actor_forward(obs, params, *, tb_max=1024):
    """Wrapper calling the batch-tiled Pallas kernel. obs: [B, obs_dim] f32."""
    w1, b1, w2, b2, w3, b3 = params
    B, obs_dim = obs.shape
    h1_dim = w1.shape[1]                  # 512
    h2_dim = w2.shape[1]                  # 128
    action_dim = w3.shape[1]
    out_pad = _round_up(action_dim, 128)  # lane-dense output slab

    # Batch tile: multiple of 8 (sublane), capped so per-step VMEM
    # (activations + double-buffered obs/out) stays well inside 32 MiB even
    # on v7x's smaller VMEM. Pad B up to a multiple of TB.
    TB = min(tb_max, _round_up(B, 8))
    B_pad = _round_up(B, TB)

    # bf16 operands for the MXU; biases stay f32 (added to the f32 accumulator).
    obs_p = obs.astype(jnp.bfloat16)
    if B_pad != B:
        obs_p = jnp.pad(obs_p, ((0, B_pad - B), (0, 0)))
    w1b = w1.astype(jnp.bfloat16)
    w2b = w2.astype(jnp.bfloat16)
    w3b = jnp.pad(w3, ((0, 0), (0, out_pad - action_dim))).astype(jnp.bfloat16)
    b3p = jnp.pad(b3, ((0, 0), (0, out_pad - action_dim)))

    grid = (B_pad // TB,)
    out = pl.pallas_call(
        actor_kernel,
        out_shape=jax.ShapeDtypeStruct((B_pad, out_pad), jnp.float32),
        grid=grid,
        in_specs=[
            # obs: streams one TB-row tile per grid step.
            pl.BlockSpec((TB, obs_dim), lambda i: (i, 0)),
            # weights/biases: block index never changes -> resident in VMEM.
            pl.BlockSpec((obs_dim, h1_dim), lambda i: (0, 0)),
            pl.BlockSpec((1, h1_dim), lambda i: (0, 0)),
            pl.BlockSpec((h1_dim, h2_dim), lambda i: (0, 0)),
            pl.BlockSpec((1, h2_dim), lambda i: (0, 0)),
            pl.BlockSpec((h2_dim, out_pad), lambda i: (0, 0)),
            pl.BlockSpec((1, out_pad), lambda i: (0, 0)),
        ],
        out_specs=pl.BlockSpec((TB, out_pad), lambda i: (i, 0)),
        compiler_params=pltpu.CompilerParams(
            dimension_semantics=("parallel",),   # shard batch tiles on v7x's 2 TCs
            vmem_limit_bytes=32 * 1024 * 1024,
        ),
    )(obs_p, w1b, b1, w2b, b2, w3b, b3p)

    # Slice away batch padding and the lane-padded action columns.
    return out[:B, :action_dim]


def init_actor_params(key, obs_dim, action_dim):
    """Deterministic init mimicking PyTorch nn.Linear default:
    U(-1/sqrt(fan_in), 1/sqrt(fan_in)) for both weights and biases.
    Weights are stored as [in, out] (already transposed for x @ W)."""
    dims = [(obs_dim, 512), (512, 128), (128, action_dim)]
    params = []
    for (fan_in, fan_out) in dims:
        key, kw, kb = jax.random.split(key, 3)
        bound = 1.0 / jnp.sqrt(jnp.float32(fan_in))
        w = jax.random.uniform(kw, (fan_in, fan_out), jnp.float32,
                               minval=-bound, maxval=bound)
        b = jax.random.uniform(kb, (1, fan_out), jnp.float32,
                               minval=-bound, maxval=bound)
        params += [w, b]
    return tuple(params)


def actor_forward_ref(obs, params):
    """Pure-JAX reference mirroring the kernel's bf16-operand / f32-accumulate
    numerics (so the correctness check is precision-for-precision)."""
    w1, b1, w2, b2, w3, b3 = params
    x = obs.astype(jnp.bfloat16)
    h1 = jnp.maximum(
        jnp.dot(x, w1.astype(jnp.bfloat16),
                preferred_element_type=jnp.float32) + b1, 0.0)
    h2 = jnp.maximum(
        jnp.dot(h1.astype(jnp.bfloat16), w2.astype(jnp.bfloat16),
                preferred_element_type=jnp.float32) + b2, 0.0)
    h3 = jnp.dot(h2.astype(jnp.bfloat16), w3.astype(jnp.bfloat16),
                 preferred_element_type=jnp.float32) + b3
    return jnp.tanh(h3)


if __name__ == "__main__":
    key = jax.random.PRNGKey(0)
    obs_dim, action_dim, batch = 16, 8, 2

    key, k_obs, k_params = jax.random.split(key, 3)
    obs = jax.random.normal(k_obs, (batch, obs_dim), jnp.float32)
    params = init_actor_params(k_params, obs_dim, action_dim)

    out = actor_forward(obs, params)
    out = jax.block_until_ready(out)

    ref = actor_forward_ref(obs, params)
    assert out.shape == (batch, action_dim)
    assert jnp.allclose(out, ref, atol=2e-3, rtol=2e-3), "mismatch vs reference"

    # Sanity: also within bf16-rounding distance of the pure-f32 math.
    w1, b1, w2, b2, w3, b3 = params
    ref_f32 = jnp.tanh(
        jnp.maximum(jnp.maximum(obs @ w1 + b1, 0.0) @ w2 + b2, 0.0) @ w3 + b3)
    assert jnp.allclose(out, ref_f32, atol=5e-2, rtol=5e-2), "bf16 drift too large"

    print("KERNEL_OK")
</pallas_src>

<mosaic_0001>
module attributes {stable_mosaic.version = 11 : i64} {
  func.func @actor_kernel(%arg0: i32, %arg1: memref<8x16xbf16, #tpu.memory_space<vmem>>, %arg2: memref<16x512xbf16, #tpu.memory_space<vmem>>, %arg3: memref<1x512xf32, #tpu.memory_space<vmem>>, %arg4: memref<512x128xbf16, #tpu.memory_space<vmem>>, %arg5: memref<1x128xf32, #tpu.memory_space<vmem>>, %arg6: memref<128x128xbf16, #tpu.memory_space<vmem>>, %arg7: memref<1x128xf32, #tpu.memory_space<vmem>>, %arg8: memref<8x128xf32, #tpu.memory_space<vmem>>) attributes {dimension_semantics = [#tpu.dimension_semantics<parallel>], iteration_bounds = array<i64: 1>, scalar_prefetch = 0 : i64, scratch_operands = 0 : i64, tpu.core_type = #tpu.core_type<tc>, window_params = [{transform_indices = @transform_0, window_bounds = array<i64: 8, 16>}, {pipeline_mode = #tpu.pipeline_mode<synchronous>, transform_indices = @transform_1, window_bounds = array<i64: 16, 512>}, {pipeline_mode = #tpu.pipeline_mode<synchronous>, transform_indices = @transform_2, window_bounds = array<i64: 1, 512>}, {pipeline_mode = #tpu.pipeline_mode<synchronous>, transform_indices = @transform_3, window_bounds = array<i64: 512, 128>}, {pipeline_mode = #tpu.pipeline_mode<synchronous>, transform_indices = @transform_4, window_bounds = array<i64: 1, 128>}, {pipeline_mode = #tpu.pipeline_mode<synchronous>, transform_indices = @transform_5, window_bounds = array<i64: 128, 128>}, {pipeline_mode = #tpu.pipeline_mode<synchronous>, transform_indices = @transform_6, window_bounds = array<i64: 1, 128>}, {transform_indices = @transform_7, window_bounds = array<i64: 8, 128>}]} {
    %c0 = arith.constant 0 : index
    %c0_0 = arith.constant 0 : index
    %0 = vector.load %arg1[%c0, %c0_0] : memref<8x16xbf16, #tpu.memory_space<vmem>>, vector<8x16xbf16>
    %c0_1 = arith.constant 0 : index
    %c0_2 = arith.constant 0 : index
    %1 = vector.load %arg2[%c0_1, %c0_2] : memref<16x512xbf16, #tpu.memory_space<vmem>>, vector<16x512xbf16>
    %cst = arith.constant dense<0.000000e+00> : vector<8x512xf32>
    %2 = tpu.matmul %0, %1, %cst {dimension_numbers = #tpu.dot_dimension_numbers<[1], [0], [0], [1], [0, 0, 1, 1], [], []>} : vector<8x16xbf16>, vector<16x512xbf16>, vector<8x512xf32> -> vector<8x512xf32>
    %c0_3 = arith.constant 0 : index
    %c0_4 = arith.constant 0 : index
    %3 = vector.load %arg3[%c0_3, %c0_4] : memref<1x512xf32, #tpu.memory_space<vmem>>, vector<1x512xf32>
    %4 = vector.broadcast %3 : vector<1x512xf32> to vector<8x512xf32>
    %5 = arith.addf %2, %4 : vector<8x512xf32>
    %cst_5 = arith.constant 0.000000e+00 : f32
    %6 = vector.broadcast %cst_5 : f32 to vector<8x512xf32>
    %7 = arith.maximumf %5, %6 : vector<8x512xf32>
    %8 = arith.truncf %7 : vector<8x512xf32> to vector<8x512xbf16>
    %c0_6 = arith.constant 0 : index
    %c0_7 = arith.constant 0 : index
    %9 = vector.load %arg4[%c0_6, %c0_7] : memref<512x128xbf16, #tpu.memory_space<vmem>>, vector<512x128xbf16>
    %cst_8 = arith.constant dense<0.000000e+00> : vector<8x128xf32>
    %10 = tpu.matmul %8, %9, %cst_8 {dimension_numbers = #tpu.dot_dimension_numbers<[1], [0], [0], [1], [0, 0, 1, 1], [], []>} : vector<8x512xbf16>, vector<512x128xbf16>, vector<8x128xf32> -> vector<8x128xf32>
    %c0_9 = arith.constant 0 : index
    %c0_10 = arith.constant 0 : index
    %11 = vector.load %arg5[%c0_9, %c0_10] : memref<1x128xf32, #tpu.memory_space<vmem>>, vector<1x128xf32>
    %12 = vector.broadcast %11 : vector<1x128xf32> to vector<8x128xf32>
    %13 = arith.addf %10, %12 : vector<8x128xf32>
    %cst_11 = arith.constant 0.000000e+00 : f32
    %14 = vector.broadcast %cst_11 : f32 to vector<8x128xf32>
    %15 = arith.maximumf %13, %14 : vector<8x128xf32>
    %16 = arith.truncf %15 : vector<8x128xf32> to vector<8x128xbf16>
    %c0_12 = arith.constant 0 : index
    %c0_13 = arith.constant 0 : index
    %17 = vector.load %arg6[%c0_12, %c0_13] : memref<128x128xbf16, #tpu.memory_space<vmem>>, vector<128x128xbf16>
    %cst_14 = arith.constant dense<0.000000e+00> : vector<8x128xf32>
    %18 = tpu.matmul %16, %17, %cst_14 {dimension_numbers = #tpu.dot_dimension_numbers<[1], [0], [0], [1], [0, 0, 1, 1], [], []>} : vector<8x128xbf16>, vector<128x128xbf16>, vector<8x128xf32> -> vector<8x128xf32>
    %c0_15 = arith.constant 0 : index
    %c0_16 = arith.constant 0 : index
    %19 = vector.load %arg7[%c0_15, %c0_16] : memref<1x128xf32, #tpu.memory_space<vmem>>, vector<1x128xf32>
    %20 = vector.broadcast %19 : vector<1x128xf32> to vector<8x128xf32>
    %21 = arith.addf %18, %20 : vector<8x128xf32>
    %22 = math.tanh %21 : vector<8x128xf32>
    %c0_17 = arith.constant 0 : index
    %c0_18 = arith.constant 0 : index
    %23 = vector.load %arg8[%c0_17, %c0_18] : memref<8x128xf32, #tpu.memory_space<vmem>>, vector<8x128xf32>
    tpu.vector_store %arg8[%c0_17, %c0_18], %22 {strides = array<i32>} : memref<8x128xf32, #tpu.memory_space<vmem>>, vector<8x128xf32>,
    return
  }
  func.func @transform_0(%arg0: i32) -> (i32, i32) {
    %c0_i32 = arith.constant 0 : i32
    %c0_i32_0 = arith.constant 0 : i32
    return %arg0, %c0_i32 : i32, i32
  }
  func.func @transform_1(%arg0: i32) -> (i32, i32) {
    %c0_i32 = arith.constant 0 : i32
    %c0_i32_0 = arith.constant 0 : i32
    %c0_i32_1 = arith.constant 0 : i32
    return %c0_i32, %c0_i32_0 : i32, i32
  }
  func.func @transform_2(%arg0: i32) -> (i32, i32) {
    %c0_i32 = arith.constant 0 : i32
    %c0_i32_0 = arith.constant 0 : i32
    %c0_i32_1 = arith.constant 0 : i32
    return %c0_i32, %c0_i32_0 : i32, i32
  }
  func.func @transform_3(%arg0: i32) -> (i32, i32) {
    %c0_i32 = arith.constant 0 : i32
    %c0_i32_0 = arith.constant 0 : i32
    %c0_i32_1 = arith.constant 0 : i32
    return %c0_i32, %c0_i32_0 : i32, i32
  }
  func.func @transform_4(%arg0: i32) -> (i32, i32) {
    %c0_i32 = arith.constant 0 : i32
    %c0_i32_0 = arith.constant 0 : i32
    %c0_i32_1 = arith.constant 0 : i32
    return %c0_i32, %c0_i32_0 : i32, i32
  }
  func.func @transform_5(%arg0: i32) -> (i32, i32) {
    %c0_i32 = arith.constant 0 : i32
    %c0_i32_0 = arith.constant 0 : i32
    %c0_i32_1 = arith.constant 0 : i32
    return %c0_i32, %c0_i32_0 : i32, i32
  }
  func.func @transform_6(%arg0: i32) -> (i32, i32) {
    %c0_i32 = arith.constant 0 : i32
    %c0_i32_0 = arith.constant 0 : i32
    %c0_i32_1 = arith.constant 0 : i32
    return %c0_i32, %c0_i32_0 : i32, i32
  }
  func.func @transform_7(%arg0: i32) -> (i32, i32) {
    %c0_i32 = arith.constant 0 : i32
    %c0_i32_0 = arith.constant 0 : i32
    return %arg0, %c0_i32 : i32, i32
  }
}

</mosaic_0001>

<bundles_post_ra>
// kernel: tpu_custom_call.1
= control target key start
LH: loop header
LB: loop body
LE: loop exit
PB: predicated region body
PF: predicated region fallthrough
CT: control target
= control target key end

     0   :  { %12 = vsyncpa [#allocation3], 0  ;;  %s1085_s0 = inlined_call_operand.hbm [shape: bf16[8,16], index: 0, kind: input, shape index: {}]   ;;  %s1086_s1 = inlined_call_operand.hbm [shape: bf16[16,512], index: 1, kind: input, shape index: {}]   ;;  %s1087_s2 = inlined_call_operand.hbm [shape: f32[1,512], index: 2, kind: input, shape index: {}]   ;;  %s1088_s3 = inlined_call_operand.hbm [shape: bf16[512,128], index: 3, kind: input, shape index: {}]   ;;  %s1089_s4 = inlined_call_operand.vmem [shape: f32[1,128], index: 4, kind: input, shape index: {}]   ;;  %s1090_s5 = inlined_call_operand.hbm [shape: bf16[128,128], index: 5, kind: input, shape index: {}]   ;;  %s1091_s6 = inlined_call_operand.vmem [shape: f32[1,128], index: 6, kind: input, shape index: {}]   ;;  %s1092_s7 = inlined_call_operand.hbm [shape: f32[8,128], index: 7, kind: output, shape index: {}]  }
   0x1   :  { %13 = vsyncpa [#allocation6], 0 }
   0x2   :  { %14 = vsyncpa [#allocation9], 0  ;;  %s31_s26 = sshll.u32 %s1086_s1, 4  ;;  %s32_s26 = int_to_ptr.hbm [resolvable:$true] %s31_s26 }
   0x3   :  { %15 = vsyncpa [#allocation4], 0  ;;  %s1007_s27 = smov [#allocation5]   ;;  %s55_s8 = sshll.u32 %s1088_s3, 4  ;;  %s56_s8 = int_to_ptr.hbm [resolvable:$true] %s55_s8 }
   0x4   :  { %s33_s28 = sshll.u32 %s1007_s27, 4  ;;  %s1008_s9 = smov 256   ;;  %s34_s28 = int_to_ptr.vmem [resolvable:$true] %s33_s28 }
   0x5   :  { %s1009_s10 = smov 16   ;;  %s1010_s11 = smov [#allocation8]  }
   0x6   :  { %39 = dma.hbm_to_vmem [thread:$0]  %s32_s26, 512, %s34_s28, [#allocation6], %s1008_s9, %s1008_s9, %s1009_s10  }
   0x7   :  { %s57_s12 = sshll.u32 %s1010_s11, 4  ;;  %s1011_s13 = smov 64   ;;  %s58_s12 = int_to_ptr.vmem [resolvable:$true] %s57_s12 }
   0x8   :  { %s1012_s14 = smov 4   ;;  %s21_s16 = sshll.u32 %s1085_s0, 4  ;;  %s22_s16 = int_to_ptr.hbm [resolvable:$true] %s21_s16 }
   0x9   :  { %63 = dma.hbm_to_vmem [thread:$0]  %s56_s8, 4096, %s58_s12, [#allocation9], %s1011_s13, %s1011_s13, %s1012_s14  }
   0xa   :  { %s1013_s17 = smov [#allocation2]   ;;  %s45_s20 = sshll.u32 %s1087_s2, 4  ;;  %s46_s20 = int_to_ptr.hbm [resolvable:$true] %s45_s20 }
   0xb   :  { %s23_s18 = sshll.u32 %s1013_s17, 4  ;;  %s1014_s21 = smov [#allocation7]   ;;  %s24_s18 = int_to_ptr.vmem [resolvable:$true] %s23_s18 }
   0xc   :  { %26 = dma.hbm_to_vmem [thread:$0]  %s22_s16, 64, %s24_s18, [#allocation3]  }
   0xd   :  { %s47_s22 = sshll.u32 %s1014_s21, 4  ;;  %s70_s25 = sshll.u32 %s1090_s5, 4  ;;  %s48_s22 = int_to_ptr.vmem [resolvable:$true] %s47_s22  ;;  %s71_s25 = int_to_ptr.hbm [resolvable:$true] %s70_s25 }
   0xe   :  { %50 = dma.hbm_to_vmem [thread:$0]  %s46_s20, 64, %s48_s22, [#allocation6]  }
   0xf   :  { %s1015_s0 = smov [#allocation10]  }
  0x10   :  { %s72_s26 = sshll.u32 %s1015_s0, 4  ;;  %s73_s26 = int_to_ptr.vmem [resolvable:$true] %s72_s26 }
  0x11   :  { %78 = dma.hbm_to_vmem [thread:$0]  %s71_s25, 1024, %s73_s26, [#allocation9], %s1011_s13, %s1011_s13, %s1012_s14  }
  0x12   :  { %999 = dma.done.wait [#allocation3], 64  }
  0x13   :  { %1000 = vsyncadd [#allocation3], 4294967232 }
  0x14   :  { %1001 = dma.done.wait [#allocation6], 576  }
  0x15   :  { %1002 = vsyncadd [#allocation6], 4294966720 }
  0x16   :  { %1003 = dma.done.wait [#allocation9], 5120  }
  0x17   :  { %1004 = vsyncadd [#allocation9], 4294962176  ;;  %v619_v0 = vld [vmem:[#allocation5] sm:$0xf]  ;;  %v799_v1 = vld [vmem:[#allocation5 + $0xc] sm:$0xf0] }
  0x18   :  { %v627_v2 = vld [vmem:[#allocation5 + $0x8] sm:$0xf]  ;;  %v620_v3 = vor.u32 %v799_v1, %v619_v0  ;;  %v800_v4 = vld [vmem:[#allocation5 + $0x14] sm:$0xf0]  ;;  %v798_v5 = vld [vmem:[#allocation5 + $0xc] sm:$0xf] }
  0x19   :  { %v629_v6 = vld [vmem:[#allocation5 + $0x18] sm:$0xf0]  ;;  %v628_v7 = vor.u32 %v800_v4, %v627_v2  ;;  %v797_v9 = vld [vmem:[#allocation5 + $0x4] sm:$0xf]  ;;  %v621_v10 = vld [vmem:[#allocation5 + $0x10] sm:$0xf0] }
  0x1a   :  { %v632_v8 = vor.u32 %v798_v5, %v629_v6  ;;  %148 = vmatpush.bf16.msra.mxu1 %v620_v3  ;;  %v102_v11 = vld [vmem:[#allocation2] sm:$0xf]  ;;  %vm137_vm0 = vcmask 130048   ;;  %v624_v12 = vor.u32 %v797_v9, %v621_v10  ;;  %v807_v16 = vld [vmem:[#allocation8 + $0x30] sm:$0xff]  ;;  %v806_v21 = vld [vmem:[#allocation8 + $0x28] sm:$0xff]  ;;  %s605_s9 = sshll.u32 %s1092_s7, 4  ;;  %s606_s9 = int_to_ptr.hbm [resolvable:$true] %s605_s9 }
  0x1b   :  { %v808_v13 = vld [vmem:[#allocation8 + $0x38] sm:$0xff]  ;;  %174 = vmatpush.bf16.msra.mxu2 %v628_v7  ;;  %v823_v17 = vld [vmem:[#allocation8 + $0xb0] sm:$0xff]  ;;  %v822_v22 = vld [vmem:[#allocation8 + $0xa8] sm:$0xff] }
  0x1c   :  { %v824_v14 = vld [vmem:[#allocation8 + $0xb8] sm:$0xff]  ;;  %187 = vmatpush.bf16.msra.mxu3 %v632_v8  ;;  %461 = vmatpush.bf16.msra.mxu0 %v808_v13  ;;  %v831_v19 = vld [vmem:[#allocation8 + $0xf0] sm:$0xff]  ;;  %v830_v23 = vld [vmem:[#allocation8 + $0xe8] sm:$0xff] }
  0x1d   :  { %v832_v15 = vld [vmem:[#allocation8 + $0xf8] sm:$0xff]  ;;  %633 = vmatmul.msk.bf16.vlgmr.msra.gmra.mxu1 %vm137_vm0, %v102_v11  ;;  %v815_v20 = vld [vmem:[#allocation8 + $0x70] sm:$0xff]  ;;  %v805_v24 = vld [vmem:[#allocation8 + $0x20] sm:$0xff] }
  0x1e   :  { %161 = vmatpush.bf16.msrb.mxu1 %v624_v12  ;;  %v816_v18 = vld [vmem:[#allocation8 + $0x78] sm:$0xff]  ;;  %635 = vmatmul.msk.bf16.vlgmr.msra.gmra.mxu2 %vm137_vm0, %v102_v11  ;;  %v821_v25 = vld [vmem:[#allocation8 + $0xa0] sm:$0xff]  ;;  %v803_v30 = vld [vmem:[#allocation8 + $0x10] sm:$0xff] }
  0x1f   :  { %487 = vmatpush.bf16.msrb.mxu2 %v824_v14  ;;  %636 = vmatmul.msk.bf16.vlgmr.msra.gmra.mxu3 %vm137_vm0, %v102_v11  ;;  %v829_v26 = vld [vmem:[#allocation8 + $0xe0] sm:$0xff]  ;;  %v804_v27 = vld [vmem:[#allocation8 + $0x18] sm:$0xff]  ;;  %v802_v31 = vld [vmem:[#allocation8 + $0x8] sm:$0xff] }
  0x20   :  { %500 = vmatpush.bf16.msrb.mxu3 %v832_v15  ;;  %462 = vmatpush.bf16.msra.mxu0 %v807_v16  ;;  %v820_v28 = vld [vmem:[#allocation8 + $0x98] sm:$0xff]  ;;  %v814_v32 = vld [vmem:[#allocation8 + $0x68] sm:$0xff]  ;;  %v819_v33 = vld [vmem:[#allocation8 + $0x90] sm:$0xff] }
  0x21   :  { %v828_v29 = vld [vmem:[#allocation8 + $0xd8] sm:$0xff]  ;;  %v827_v34 = vld [vmem:[#allocation8 + $0xd0] sm:$0xff]  ;;  %v801_v35 = vld [vmem:[#allocation8] sm:$0xff] }
  0x22   :  { %474 = vmatpush.bf16.msra.mxu1 %v816_v18  ;;  %v813_v36 = vld [vmem:[#allocation8 + $0x60] sm:$0xff]  ;;  %v818_v37 = vld [vmem:[#allocation8 + $0x88] sm:$0xff]  ;;  %v812_v39 = vld [vmem:[#allocation8 + $0x58] sm:$0xff] }
  0x23   :  { %488 = vmatpush.bf16.msrb.mxu2 %v823_v17  ;;  %v826_v38 = vld [vmem:[#allocation8 + $0xc8] sm:$0xff]  ;;  %v817_v40 = vld [vmem:[#allocation8 + $0x80] sm:$0xff]  ;;  %v811_v42 = vld [vmem:[#allocation8 + $0x50] sm:$0xff] }
  0x24   :  { %501 = vmatpush.bf16.msrb.mxu3 %v831_v19  ;;  %463 = vmatpush.bf16.msra.mxu0 %v806_v21  ;;  %v825_v41 = vld [vmem:[#allocation8 + $0xc0] sm:$0xff]  ;;  %v810_v43 = vld [vmem:[#allocation8 + $0x48] sm:$0xff]  ;;  %v840_v45 = vld [vmem:[#allocation10 + $0x38] sm:$0xff] }
  0x25   :  { %v809_v44 = vld [vmem:[#allocation8 + $0x40] sm:$0xff]  ;;  %v107_v46 = vld [vmem:[#allocation7] sm:$0xf]  ;;  %v839_v7 = vld [vmem:[#allocation10 + $0x30] sm:$0xff] }
  0x26   :  { %475 = vmatpush.bf16.msra.mxu1 %v815_v20  ;;  %v109_v47 = vperm.slane %v107_v46, 0  ;;  %v111_v51 = vperm.slane %v107_v46, 2  ;;  %v112_v52 = vperm.slane %v107_v46, 3  ;;  %v110_v63 = vperm.slane %v107_v46, 1  ;;  %v838_v8 = vld [vmem:[#allocation10 + $0x28] sm:$0xff]  ;;  %v837_v9 = vld [vmem:[#allocation10 + $0x20] sm:$0xff] }
  0x27   :  { %489 = vmatpush.bf16.msrb.mxu2 %v822_v22  ;;  %v836_v10 = vld [vmem:[#allocation10 + $0x18] sm:$0xff]  ;;  %v834_v12 = vld [vmem:[#allocation10 + $0x8] sm:$0xff]  ;;  %v833_v13 = vld [vmem:[#allocation10] sm:$0xff] }
  0x28   :  { %502 = vmatpush.bf16.msrb.mxu3 %v830_v23  ;;  %464 = vmatpush.bf16.msra.mxu0 %v805_v24  ;;  %v851_v16 = vld [vmem:[%s1089_s4] ss:$0 sm:$0xff]  ;;  %s1016_s4 = smov [#allocation11]  }
  0x29   :  { %s603_s29 = sshll.u32 %s1016_s4, 4  ;;  %s604_s29 = int_to_ptr.vmem [resolvable:$true] %s603_s29 }
  0x2a   :  { %476 = vmatpush.bf16.msra.mxu1 %v814_v32 }
  0x2b   :  { %490 = vmatpush.bf16.msrb.mxu2 %v821_v25 }
  0x2c   :  { %503 = vmatpush.bf16.msrb.mxu3 %v829_v26  ;;  %465 = vmatpush.bf16.msra.mxu0 %v804_v27 }
  0x2d   :  { %634 = vmatmul.msk.bf16.vlgmr.msrb.gmra.mxu1 %vm137_vm0, %v102_v11  ;;  %v835_v11 = vld [vmem:[#allocation10 + $0x10] sm:$0xff] }
  0x2e   :  { %477 = vmatpush.bf16.msra.mxu1 %v813_v36 }
  0x2f   :  { %491 = vmatpush.bf16.msrb.mxu2 %v820_v28 }
  0x30   :  { %504 = vmatpush.bf16.msrb.mxu3 %v828_v29  ;;  %466 = vmatpush.bf16.msra.mxu0 %v803_v30  ;;  %v852_v29 = vld [vmem:[%s1091_s6] ss:$0 sm:$0xff] }
  0x32   :  { %478 = vmatpush.bf16.msra.mxu1 %v812_v39 }
  0x33   :  { %492 = vmatpush.bf16.msrb.mxu2 %v819_v33 }
  0x34   :  { %467 = vmatpush.bf16.msra.mxu0 %v802_v31  ;;  %505 = vmatpush.bf16.msrb.mxu3 %v827_v34 }
  0x36   :  { %479 = vmatpush.bf16.msra.mxu1 %v811_v42 }
  0x37   :  { %493 = vmatpush.bf16.msrb.mxu2 %v818_v37 }
  0x38   :  { %468 = vmatpush.bf16.msra.mxu0 %v801_v35  ;;  %506 = vmatpush.bf16.msrb.mxu3 %v826_v38 }
  0x3a   :  { %480 = vmatpush.bf16.msra.mxu1 %v810_v43 }
  0x3b   :  { %494 = vmatpush.bf16.msrb.mxu2 %v817_v40 }
  0x3c   :  { %507 = vmatpush.bf16.msrb.mxu3 %v825_v41  ;;  %583 = vmatpush.bf16.msrb.mxu0 %v840_v45 }
  0x3e   :  { %481 = vmatpush.bf16.msra.mxu1 %v809_v44 }
  0x40   :  { %584 = vmatpush.bf16.msrb.mxu0 %v839_v7 }
  0x44   :  { %585 = vmatpush.bf16.msrb.mxu0 %v838_v8 }
  0x48   :  { %586 = vmatpush.bf16.msrb.mxu0 %v837_v9 }
  0x4c   :  { %587 = vmatpush.bf16.msrb.mxu0 %v836_v10 }
  0x50   :  { %588 = vmatpush.bf16.msrb.mxu0 %v835_v11 }
  0x54   :  { %589 = vmatpush.bf16.msrb.mxu0 %v834_v12 }
  0x58   :  { %590 = vmatpush.bf16.msrb.mxu0 %v833_v13 }
  0x9a   :  { %v150_v48 = vpop.f32.mrf.mxu1 }
  0x9b   :  { %v151_v49 = vadd.f32 %v150_v48, %v109_v47 }
  0x9d   :  { %v193_v50 = vmax.f32 %v151_v49, 0.0 }
  0x9f   :  { %v197_v53 = vpack.c.bf16 %v193_v50, %v193_v50 }
  0xa1   :  { %v176_v54 = vpop.f32.mrf.mxu2  ;;  %469 = vmatmul.bf16.vlgmr.msra.gmra.mxu0 %v197_v53 }
  0xa2   :  { %v189_v55 = vpop.f32.mrf.mxu3  ;;  %v177_v56 = vadd.f32 %v176_v54, %v111_v51  ;;  %v152_v58 = vpop.f32.mrf.mxu1 }
  0xa3   :  { %v190_v57 = vadd.f32 %v189_v55, %v112_v52 }
  0xa4   :  { %v195_v59 = vmax.f32 %v177_v56, 0.0 }
  0xa5   :  { %v196_v60 = vmax.f32 %v190_v57, 0.0 }
  0xa6   :  { %v199_v61 = vpack.c.bf16 %v195_v59, %v195_v59 }
  0xa7   :  { %v200_v62 = vpack.c.bf16 %v196_v60, %v196_v60 }
  0xa8   :  { %495 = vmatmul.bf16.vlgmr.msrb.gmra.mxu2 %v199_v61 }
  0xa9   :  { %508 = vmatmul.bf16.vlgmr.msrb.gmra.mxu3 %v200_v62  ;;  %v178_v0 = vpop.f32.mrf.mxu2 }
  0xaa   :  { %v191_v1 = vpop.f32.mrf.mxu3  ;;  %v163_v2 = vpop.f32.mrf.mxu1 }
  0xab   :  { %v164_v3 = vadd.f32 %v163_v2, %v110_v63 }
  0xad   :  { %v194_v4 = vmax.f32 %v164_v3, 0.0 }
  0xaf   :  { %v198_v5 = vpack.c.bf16 %v194_v4, %v194_v4 }
  0xb1   :  { %482 = vmatmul.bf16.vlgmr.msra.gmra.mxu1 %v198_v5 }
  0xb2   :  { %v165_v6 = vpop.f32.mrf.mxu1 }
 0x11e   :  { %v470_v14 = vpop.f32.mrf.mxu0 }
 0x11f   :  { %v471_v19 = vadd.f32 %v851_v16, %v470_v14 }
 0x126   :  { %v472_v15 = vpop.f32.mrf.mxu0 }
 0x12b   :  { %v496_v17 = vpop.f32.mrf.mxu2 }
 0x12c   :  { %v509_v18 = vpop.f32.mrf.mxu3 }
 0x12e   :  { %v483_v20 = vpop.f32.mrf.mxu1 }
 0x12f   :  { %v484_v21 = vadd.f32 %v483_v20, %v471_v19 }
 0x131   :  { %v497_v22 = vadd.f32 %v496_v17, %v484_v21 }
 0x133   :  { %v510_v23 = vadd.f32 %v509_v18, %v497_v22  ;;  %v498_v24 = vpop.f32.mrf.mxu2 }
 0x134   :  { %v511_v25 = vpop.f32.mrf.mxu3 }
 0x135   :  { %v513_v26 = vmax.f32 %v510_v23, 0.0 }
 0x136   :  { %v485_v27 = vpop.f32.mrf.mxu1 }
 0x137   :  { %v514_v28 = vpack.c.bf16 %v513_v26, %v513_v26 }
 0x139   :  { %591 = vmatmul.bf16.vlgmr.msrb.gmra.mxu0 %v514_v28 }
 0x1b6   :  { %v592_v30 = vpop.f32.mrf.mxu0 }
 0x1b7   :  { %v593_v31 = vadd.f32 %v852_v29, %v592_v30 }
 0x1b9   :  { %853 = vtanh.f32 %v593_v31 }
 0x1be   :  { %v594_v32 = vpop.f32.mrf.mxu0 }
 0x1bf   :  { %v854_v33 = vpop.eup %853 }
 0x1c0   :  { %597 = vst [vmem:[#allocation11] sm:$0xff] %v854_v33 }
 0x1c1   :  { %608 = dma.vmem_to_hbm [thread:$0]  %s604_s29, 128, %s606_s9, [#allocation4]  }
 0x1c2   :  { %1005 = dma.done.wait [#allocation4], 128  }
 0x1c3   :  { %1006 = vsyncadd [#allocation4], 4294967168 }
 0x1c4   :  { %613 = vsyncpa [#allocation3], 1 }
 0x1c5   :  { %614 = vsyncpa [#allocation6], 1 }
 0x1c6   :  { %615 = vsyncpa [#allocation9], 1 }
 0x1c7   :  { %616 = vsyncpa [#allocation4], 1 }

</bundles_post_ra>
